<compile_context>
chip_gen: v7x
topology: tpu7x:2x2x1
jax: 0.10.0
libtpu: 0.0.40
codegen_flags: <defaults>
</compile_context>

<pallas_src>
import functools

import jax
import jax.numpy as jnp
from jax.experimental import pallas as pl
from jax.experimental.pallas import tpu as pltpu


# ----------------------------------------------------------------------------
# Fused kernel: one MXU matmul over the im2col slab + folded-BN bias + ReLU
# ----------------------------------------------------------------------------
def _matmul_bias_relu_kernel(p_ref, w_ref, b_ref, o_ref):
    # p_ref: (tile_m, K)    bf16 im2col patch slab
    # w_ref: (K, Cout)      bf16 weights with BN scale folded in
    # b_ref: (1, Cout)      f32 bias with BN folded in
    # o_ref: (tile_m, Cout) bf16 output (lane-dense: Cout % 128 == 0)
    y = jnp.dot(p_ref[...], w_ref[...], preferred_element_type=jnp.float32)
    y = jnp.maximum(y + b_ref[...], 0.0)          # f32 epilogue (v5e-safe)
    o_ref[...] = y.astype(o_ref.dtype)


# ----------------------------------------------------------------------------
# Wrapper: NCHW in, NCHW (default) or NHWC out, single pallas_call
# ----------------------------------------------------------------------------
def base_block_relu(x_nchw, w_hwio, bias, *, stride=1, padding=1,
                    tile_m=128, out_dtype=jnp.bfloat16, out_layout="NCHW"):
    """x_nchw: (N, Cin, H, W) f32.  w_hwio: (KH, KW, Cin, Cout) BN-folded.
    bias: (Cout,) BN-folded.  Returns (N, Cout, Ho, Wo) (or NHWC) in out_dtype."""
    n, cin, h, w = x_nchw.shape
    kh, kw, cin_w, cout = w_hwio.shape
    assert cin_w == cin
    assert tile_m % 8 == 0
    ho = (h + 2 * padding - kh) // stride + 1
    wo = (w + 2 * padding - kw) // stride + 1
    k = kh * kw * cin
    total_m = n * ho * wo

    # --- wrapper-side im2col (layout plumbing, not compute) ------------------
    # NCHW -> NHWC, zero-pad spatially, cast to bf16 (halves MXU input bytes).
    x = jnp.transpose(x_nchw, (0, 2, 3, 1)).astype(jnp.bfloat16)
    xp = jnp.pad(x, ((0, 0), (padding, padding), (padding, padding), (0, 0)))
    taps = []
    for ih in range(kh):
        for iw in range(kw):
            taps.append(xp[:, ih:ih + (ho - 1) * stride + 1:stride,
                           iw:iw + (wo - 1) * stride + 1:stride, :])
    # Column ordering ((ih*KW + iw)*Cin + c) matches w_hwio.reshape(K, Cout).
    patches = jnp.concatenate(taps, axis=-1).reshape(total_m, k)

    # Pad M to a multiple of tile_m (extra rows compute relu(bias), discarded).
    m_pad = -total_m % tile_m
    if m_pad:
        patches = jnp.pad(patches, ((0, m_pad), (0, 0)))
    m_padded = total_m + m_pad

    # Pad Cout to a multiple of 128 for unmasked lane-dense stores.
    c_pad = -cout % 128
    cout_p = cout + c_pad
    w_mat = w_hwio.reshape(k, cout).astype(jnp.bfloat16)
    b_row = bias.reshape(1, cout).astype(jnp.float32)
    if c_pad:
        w_mat = jnp.pad(w_mat, ((0, 0), (0, c_pad)))
        b_row = jnp.pad(b_row, ((0, 0), (0, c_pad)))

    grid_m = m_padded // tile_m
    out_bytes = jnp.dtype(out_dtype).itemsize
    flops = 2 * m_padded * k * cout_p
    bytes_accessed = (patches.size * 2 + w_mat.size * 2 + b_row.size * 4
                      + m_padded * cout_p * out_bytes)

    out = pl.pallas_call(
        _matmul_bias_relu_kernel,
        out_shape=jax.ShapeDtypeStruct((m_padded, cout_p), out_dtype),
        grid=(grid_m,),
        in_specs=[
            pl.BlockSpec((tile_m, k), lambda i: (i, 0)),
            pl.BlockSpec((k, cout_p), lambda i: (0, 0)),
            pl.BlockSpec((1, cout_p), lambda i: (0, 0)),
        ],
        out_specs=pl.BlockSpec((tile_m, cout_p), lambda i: (i, 0)),
        compiler_params=pltpu.CompilerParams(
            dimension_semantics=("parallel",)),
        cost_estimate=pl.CostEstimate(flops=flops, transcendentals=0,
                                      bytes_accessed=bytes_accessed),
    )(patches, w_mat, b_row)

    out = out[:total_m, :cout].reshape(n, ho, wo, cout)
    if out_layout == "NCHW":
        out = jnp.transpose(out, (0, 3, 1, 2))  # transpose done in bf16
    return out


# ----------------------------------------------------------------------------
# Parameter construction: Conv2d weight/bias + BatchNorm2d (init constants),
# folded into a single (weight, bias) pair for the kernel.
# ----------------------------------------------------------------------------
def make_params(key, cin, cout, ksize=3, eps=1e-5):
    k_w, k_b = jax.random.split(key)
    fan_in = cin * ksize * ksize
    fan_out = cout * ksize * ksize
    w_oihw = jax.random.normal(k_w, (cout, cin, ksize, ksize),
                               jnp.float32) * (2.0 / fan_out) ** 0.5
    bound = 1.0 / fan_in ** 0.5
    b_conv = jax.random.uniform(k_b, (cout,), jnp.float32, -bound, bound)

    # BatchNorm2d at init (inference semantics).
    gamma = jnp.ones((cout,), jnp.float32)
    beta = jnp.zeros((cout,), jnp.float32)
    mean = jnp.zeros((cout,), jnp.float32)
    var = jnp.ones((cout,), jnp.float32)
    scale = gamma / jnp.sqrt(var + eps)

    # Fold: y = scale * (conv(x) + b_conv - mean) + beta
    w_hwio = jnp.transpose(w_oihw, (2, 3, 1, 0)) * scale          # (KH,KW,Cin,Cout)
    bias = (b_conv - mean) * scale + beta
    return (w_oihw, b_conv), (w_hwio, bias)


# ----------------------------------------------------------------------------
# Pure-JAX f32 reference (conv -> BN(inference, init stats) -> ReLU)
# ----------------------------------------------------------------------------
def reference_base_block_relu(x_nchw, w_oihw, b_conv, *,
                              stride=1, padding=1, eps=1e-5):
    y = jax.lax.conv_general_dilated(
        x_nchw, w_oihw, (stride, stride),
        ((padding, padding), (padding, padding)),
        dimension_numbers=("NCHW", "OIHW", "NCHW"))
    y = y + b_conv[None, :, None, None]
    y = y * (1.0 / jnp.sqrt(1.0 + eps))     # gamma=1, beta=0, mean=0, var=1
    return jnp.maximum(y, 0.0)


if __name__ == "__main__":
    key = jax.random.PRNGKey(0)
    k_params, k_x = jax.random.split(key)

    N, CIN, H, W = 2, 4, 16, 16
    COUT = 128  # multiple of 128 -> lane-dense unmasked output stores

    (w_oihw, b_conv), (w_hwio, bias) = make_params(k_params, CIN, COUT)
    x = jax.random.normal(k_x, (N, CIN, H, W), jnp.float32)

    fwd = jax.jit(functools.partial(base_block_relu, stride=1, padding=1))
    out = jax.block_until_ready(fwd(x, w_hwio, bias))

    assert out.shape == (N, COUT, H, W), out.shape
    assert out.dtype == jnp.bfloat16, out.dtype
    assert bool(jnp.all(jnp.isfinite(out.astype(jnp.float32))))

    ref = reference_base_block_relu(x, w_oihw, b_conv)
    max_err = float(jnp.max(jnp.abs(out.astype(jnp.float32) - ref)))
    assert max_err < 5e-2, f"max abs err {max_err}"  # bf16 MXU/output vs f32 ref

    print("KERNEL_OK")
</pallas_src>

<mosaic_0001>
module attributes {stable_mosaic.version = 11 : i64} {
  func.func @_matmul_bias_relu_kernel(%arg0: i32, %arg1: memref<128x36xbf16, #tpu.memory_space<vmem>>, %arg2: memref<36x128xbf16, #tpu.memory_space<vmem>>, %arg3: memref<1x128xf32, #tpu.memory_space<vmem>>, %arg4: memref<128x128xbf16, #tpu.memory_space<vmem>>) attributes {dimension_semantics = [#tpu.dimension_semantics<parallel>], iteration_bounds = array<i64: 4>, scalar_prefetch = 0 : i64, scratch_operands = 0 : i64, tpu.core_type = #tpu.core_type<tc>, window_params = [{transform_indices = @transform_0, window_bounds = array<i64: 128, 36>}, {pipeline_mode = #tpu.pipeline_mode<synchronous>, transform_indices = @transform_1, window_bounds = array<i64: 36, 128>}, {pipeline_mode = #tpu.pipeline_mode<synchronous>, transform_indices = @transform_2, window_bounds = array<i64: 1, 128>}, {transform_indices = @transform_3, window_bounds = array<i64: 128, 128>}]} {
    %c0 = arith.constant 0 : index
    %c0_0 = arith.constant 0 : index
    %0 = vector.load %arg1[%c0, %c0_0] : memref<128x36xbf16, #tpu.memory_space<vmem>>, vector<128x36xbf16>
    %c0_1 = arith.constant 0 : index
    %c0_2 = arith.constant 0 : index
    %1 = vector.load %arg2[%c0_1, %c0_2] : memref<36x128xbf16, #tpu.memory_space<vmem>>, vector<36x128xbf16>
    %cst = arith.constant dense<0.000000e+00> : vector<128x128xf32>
    %2 = tpu.matmul %0, %1, %cst {dimension_numbers = #tpu.dot_dimension_numbers<[1], [0], [0], [1], [0, 0, 1, 1], [], []>} : vector<128x36xbf16>, vector<36x128xbf16>, vector<128x128xf32> -> vector<128x128xf32>
    %c0_3 = arith.constant 0 : index
    %c0_4 = arith.constant 0 : index
    %3 = vector.load %arg3[%c0_3, %c0_4] : memref<1x128xf32, #tpu.memory_space<vmem>>, vector<1x128xf32>
    %4 = vector.broadcast %3 : vector<1x128xf32> to vector<128x128xf32>
    %5 = arith.addf %2, %4 : vector<128x128xf32>
    %cst_5 = arith.constant 0.000000e+00 : f32
    %6 = vector.broadcast %cst_5 : f32 to vector<128x128xf32>
    %7 = arith.maximumf %5, %6 : vector<128x128xf32>
    %8 = arith.truncf %7 : vector<128x128xf32> to vector<128x128xbf16>
    %c0_6 = arith.constant 0 : index
    %c0_7 = arith.constant 0 : index
    %9 = vector.load %arg4[%c0_6, %c0_7] : memref<128x128xbf16, #tpu.memory_space<vmem>>, vector<128x128xbf16>
    tpu.vector_store %arg4[%c0_6, %c0_7], %8 {strides = array<i32>} : memref<128x128xbf16, #tpu.memory_space<vmem>>, vector<128x128xbf16>,
    return
  }
  func.func @transform_0(%arg0: i32) -> (i32, i32) {
    %c0_i32 = arith.constant 0 : i32
    %c0_i32_0 = arith.constant 0 : i32
    return %arg0, %c0_i32 : i32, i32
  }
  func.func @transform_1(%arg0: i32) -> (i32, i32) {
    %c0_i32 = arith.constant 0 : i32
    %c0_i32_0 = arith.constant 0 : i32
    %c0_i32_1 = arith.constant 0 : i32
    return %c0_i32, %c0_i32_0 : i32, i32
  }
  func.func @transform_2(%arg0: i32) -> (i32, i32) {
    %c0_i32 = arith.constant 0 : i32
    %c0_i32_0 = arith.constant 0 : i32
    %c0_i32_1 = arith.constant 0 : i32
    return %c0_i32, %c0_i32_0 : i32, i32
  }
  func.func @transform_3(%arg0: i32) -> (i32, i32) {
    %c0_i32 = arith.constant 0 : i32
    %c0_i32_0 = arith.constant 0 : i32
    return %arg0, %c0_i32 : i32, i32
  }
}

</mosaic_0001>

<bundles_post_ra>
// kernel: base_block_relu.1
= control target key start
LH: loop header
LB: loop body
LE: loop exit
PB: predicated region body
PF: predicated region fallthrough
CT: control target
= control target key end

     0   :  { %8 = vsyncpa [#allocation3], 0  ;;  %s983_s0 = inlined_call_operand.vmem [shape: bf16[512,36], index: 0, kind: input, shape index: {}]   ;;  %s984_s1 = inlined_call_operand.vmem [shape: bf16[36,128], index: 1, kind: input, shape index: {}]   ;;  %s985_s2 = inlined_call_operand.vmem [shape: f32[1,128], index: 2, kind: input, shape index: {}]   ;;  %s986_s3 = inlined_call_operand.hbm [shape: bf16[512,128], index: 3, kind: output, shape index: {}]  }
   0x1   :  { %10 = vsyncpa [#allocation3 + $0x1], 0  ;;  %s846_s12 = smov 0   ;;  %s848_s13 = smov 0  }
   0x2   :  { %s850_s14 = smov 0   ;;  %s852_s15 = smov 0  }
   0x3 LB: > { %s867_s16 = sadd.s32 4294967295, %s821_s15   ;;  %s554_s17 = sadd.s32 4294967294, %s821_s15   ;;  %s821_s15 = sphi %s852_s15, %s992_s15   ;;  %s817_s14 = sphi %s850_s14, %s991_s14   ;;  %s813_s13 = sphi %s848_s13, %s990_s13   ;;  %s809_s12 = sphi %s846_s12, %s989_s12  }
   0x4   : > { %s871_s18 = sadd.s32 1, %s821_s15   ;;  %s91_s19 = sadd.s32 1, %s817_s14 }
   0x5   : > { %s88_s20 = ssub.s32 %s821_s15, %s871_s18  ;;  %p101_p0 = scmp.ne.s32.totalorder %s817_s14, %s813_s13 }
   0x6   : > { %p89_p1 = scmp.eq.s32.totalorder %s88_s20, 0  ;;  %p102_p2 = scmp.eq.s32.totalorder %s867_s16, 3 }
   0x7   : > { %p107_p3 = scmp.ne.s32.totalorder %s813_s13, %s809_s12  ;;  %p108_p4 = scmp.eq.s32.totalorder %s554_s17, 3 }
   0x8   : > { %s882_s21 = scalar_select %p89_p1, %s817_s14, %s91_s19  }
   0x9   : > { %p884_p5 = por %p102_p2, %p101_p0  ;;  %p888_p6 = por %p108_p4, %p107_p3 }
   0xa   : > { %p557_p7 = scmp.ge.s32.totalorder %s821_s15, 1  ;;  %p141_p8 = scmp.lt.s32.totalorder %s821_s15, 5 }
   0xc   : > { %p142_p9 = pnand %p557_p7, %p141_p8 }
   0xd   : > { %v748_v0 = vld [vmem:[%s984_s1] sm:$0xff] (!%p142_p9)   ;;  %v749_v1 = vld [vmem:[%s984_s1 + $0x8] sm:$0xff] (!%p142_p9)   ;;  %s559_s28 = sshll.u32 (!%p142_p9), %s867_s16, 4  ;;  %v750_v2 = vld [vmem:[%s984_s1 + $0x10] ss:$0 sps:$4 sm:$0x33] (!%p142_p9)  }
   0xe   : > { %145 = sbr.rel (%p142_p9) target bundleno = 271 (0x10f), region = 32  ;;  %677 = vmatprep.subr.bf16.mxu0 (!%p142_p9), %v748_v0  ;;  %699 = vmatprep.subr.bf16.mxu1 (!%p142_p9), %v748_v0  ;;  %p166_p10 = scmp.lt.s32.totalorder (!%p142_p9), %s559_s28, 63  ;;  %vm281_vm0 = vcmask (!%p142_p9), 1041408   ;;  %vm256_vm1 = vcmask (!%p142_p9), 293888   ;;  %v561_v12 = vld [vmem:[%s985_s2] ss:$0 sm:$0xff] (!%p142_p9) }
   0xf   : > { %678 = vmatpush3.bf16.msra.mxu0 (!%p142_p9), %v748_v0  ;;  %702 = vmatpush3.bf16.msra.mxu1 (!%p142_p9), %v748_v0  ;;  %v283_v3 = vsel (!%p142_p9), %vm281_vm0, %v750_v2, 0  ;;  %s162_s10 = sand.u32 (!%p142_p9), 1, %s813_s13   ;;  %s618_s19 = sshll.u32 (!%p142_p9), %s867_s16, 10 }
  0x10   : > { %679 = vmatprep.subr.bf16.mxu0 (!%p142_p9), %v749_v1  ;;  %700 = vmatprep.subr.bf16.mxu1 (!%p142_p9), %v749_v1  ;;  %s558_s11 = sshll.u32 (!%p142_p9), %s162_s10, 6  ;;  %s932_s16 = scalar_lea.hbm (!%p142_p9), %s986_s3, %s618_s19 }
  0x11   : > { %s921_s17 = scalar_lea.vmem (!%p142_p9), [#allocation2], %s558_s11  ;;  %s942_s26 = scalar_lea.sflag (!%p142_p9), [#allocation3], %s162_s10 }
  0x12   : > { %s492_s20 = sshll.u32 (!%p142_p9), %s921_s17, 4  ;;  %s934_s20 = int_to_ptr.vmem [resolvable:$true] %s492_s20 }
  0x13   : > { %680 = vmatpush3.bf16.msra.mxu0 (!%p142_p9), %v749_v1  ;;  %703 = vmatpush3.bf16.msra.mxu1 (!%p142_p9), %v749_v1  ;;  %s759_s27 = scalar_lea.vmem (!%p142_p9), %s934_s20, 1024 }
  0x14   : > { %705 = vmatprep.subr.msk.bf16.mxu0 (!%p142_p9), %vm281_vm0, %v750_v2  ;;  %706 = vmatprep.subr.msk.bf16.mxu1 (!%p142_p9), %vm281_vm0, %v750_v2  ;;  %p760_p11 = scmp.ne.s32.totalorder (!%p142_p9), %s934_s20, %s759_s27 }
  0x15   : > { %s994_s28 = smov (!%p166_p10, %s559_s28), 63 }
  0x16   : > { %s560_s4 = sshll.u32 %s994_s28, 2  ;;  %p761_p12 = pnand %p760_p11, %p884_p5 }
  0x17   : > { %s169_s7 = scalar_lea.vmem %s983_s0, %s560_s4  ;;  %682 = vmatpush3.bf16.msra.mxu0 %v283_v3  ;;  %704 = vmatpush3.bf16.msra.mxu1 %v283_v3  ;;  %s823_s28 = smov [#allocation2]  }
  0x18   : > { %v751_v4 = vld [vmem:[%s169_s7] sm:$0xff]   ;;  %v753_v6 = vld [vmem:[%s169_s7 + $0x8] sm:$0xff]   ;;  %v755_v8 = vld [vmem:[%s169_s7 + $0x10] sm:$0xff]   ;;  %p762_p13 = pneg %p761_p12  ;;  %s763_s29 = sshll.u32 %s823_s28, 4  ;;  %s764_s29 = int_to_ptr.vmem [resolvable:$false] %s763_s29 }
  0x19   : > { %v752_v5 = vld [vmem:[%s169_s7 + $0x20] sm:$0xff]   ;;  %683 = vmatprep.mubr.msk.bf16.mxu0 %vm256_vm1, %v751_v4  ;;  %v754_v7 = vld [vmem:[%s169_s7 + $0x28] sm:$0xff]   ;;  %v756_v9 = vld [vmem:[%s169_s7 + $0x30] sm:$0xff]   ;;  %s765_s30 = scalar_lea.vmem %s764_s29, 2048  ;;  %p766_p0 = scmp.lt.s32.totalorder %s934_s20, %s764_s29 }
  0x1a   : > { %691 = vmatprep.mubr.msk.bf16.mxu1 %vm256_vm1, %v752_v5  ;;  %684 = vmatmul.mubr.msk.bf16.vlgmr.msra.gmra.mrb[0].mxu0 %vm256_vm1, %v753_v6  ;;  %v757_v10 = vld [vmem:[%s169_s7 + $0x18] sm:$0xff]   ;;  %p767_p1 = scmp.lt.s32.totalorder %s765_s30, %s759_s27 }
  0x1b   : > { %692 = vmatmul.mubr.msk.bf16.vlgmr.msra.gmra.mrb[0].mxu1 %vm256_vm1, %v754_v7  ;;  %687 = vmatprep.mubr.msk.bf16.mxu0 %vm256_vm1, %v755_v8  ;;  %v758_v11 = vld [vmem:[%s169_s7 + $0x38] sm:$0xff]  }
  0x1c   : > { %695 = vmatprep.mubr.msk.bf16.mxu1 %vm256_vm1, %v756_v9  ;;  %p768_p2 = por %p767_p1, %p766_p0 }
  0x1e   : > { %p769_p3 = pnand %p768_p2, %p762_p13 }
  0x22   : > { %688 = vmatmul.mubr.msk.bf16.gmra.mrb[4].mxu0 %vm256_vm1, %v757_v10 }
  0x23   : > { %696 = vmatmul.mubr.msk.bf16.gmra.mrb[4].mxu1 %vm256_vm1, %v758_v11 }
  0xed   : > { %v685_v13 = vpop.f32.mrb[0].mxu0 }
  0xee   : > { %v693_v14 = vpop.f32.mrb[0].mxu1  ;;  %v328_v15 = vadd.f32 %v685_v13, %v561_v12  ;;  %v319_v17 = vpop.f32.mrb[1].mxu0 }
  0xef   : > { %v360_v16 = vadd.f32 %v693_v14, %v561_v12  ;;  %v351_v18 = vpop.f32.mrb[1].mxu1  ;;  %v320_v19 = vadd.f32 %v561_v12, %v319_v17  ;;  %v686_v21 = vpop.f32.mrb[2].mxu0 }
  0xf0   : > { %v352_v20 = vadd.f32 %v561_v12, %v351_v18  ;;  %v694_v22 = vpop.f32.mrb[2].mxu1  ;;  %v331_v23 = vadd.f32 %v686_v21, %v561_v12  ;;  %v322_v25 = vpop.f32.mrb[3].mxu0  ;;  %v384_v29 = vmax.f32 %v328_v15, 0.0 }
  0xf1   : > { %v363_v24 = vadd.f32 %v694_v22, %v561_v12  ;;  %v354_v26 = vpop.f32.mrb[3].mxu1  ;;  %v323_v27 = vadd.f32 %v561_v12, %v322_v25  ;;  %v392_v30 = vmax.f32 %v360_v16, 0.0  ;;  %v382_v33 = vmax.f32 %v320_v19, 0.0 }
  0xf2   : > { %v355_v28 = vadd.f32 %v561_v12, %v354_v26  ;;  %v385_v31 = vmax.f32 %v331_v23, 0.0  ;;  %v390_v34 = vmax.f32 %v352_v20, 0.0 }
  0xf3   : > { %v393_v32 = vmax.f32 %v363_v24, 0.0  ;;  %v383_v35 = vmax.f32 %v323_v27, 0.0 }
  0xf4   : > { %v391_v36 = vmax.f32 %v355_v28, 0.0  ;;  %v627_v37 = vpack.c.bf16 %v385_v31, %v384_v29 }
  0xf5   : > { %v647_v38 = vpack.c.bf16 %v393_v32, %v392_v30  ;;  %v622_v39 = vpack.c.bf16 %v383_v35, %v382_v33  ;;  %v689_v41 = vpop.f32.mrb[4].mxu0 }
  0xf6   : > { %v642_v40 = vpack.c.bf16 %v391_v36, %v390_v34  ;;  %v697_v42 = vpop.f32.mrb[4].mxu1  ;;  %659 = vst [vmem:[%s921_s17 + $0x8] sm:$0xff] %v627_v37   ;;  %v344_v43 = vadd.f32 %v689_v41, %v561_v12  ;;  %v335_v45 = vpop.f32.mrb[5].mxu0 }
  0xf7   : > { %663 = vst [vmem:[%s921_s17 + $0x28] sm:$0xff] %v647_v38   ;;  %v376_v44 = vadd.f32 %v697_v42, %v561_v12  ;;  %v367_v46 = vpop.f32.mrb[5].mxu1  ;;  %623 = vst [vmem:[%s921_s17] sm:$0xff] %v622_v39   ;;  %v336_v47 = vadd.f32 %v561_v12, %v335_v45  ;;  %v690_v49 = vpop.f32.mrb[6].mxu0 }
  0xf8   : > { %662 = vst [vmem:[%s921_s17 + $0x20] sm:$0xff] %v642_v40   ;;  %v368_v48 = vadd.f32 %v561_v12, %v367_v46  ;;  %v698_v50 = vpop.f32.mrb[6].mxu1  ;;  %v347_v51 = vadd.f32 %v690_v49, %v561_v12  ;;  %v338_v53 = vpop.f32.mrb[7].mxu0  ;;  %v388_v57 = vmax.f32 %v344_v43, 0.0 }
  0xf9   : > { %v379_v52 = vadd.f32 %v698_v50, %v561_v12  ;;  %v370_v54 = vpop.f32.mrb[7].mxu1  ;;  %v339_v55 = vadd.f32 %v561_v12, %v338_v53  ;;  %v396_v58 = vmax.f32 %v376_v44, 0.0  ;;  %v386_v61 = vmax.f32 %v336_v47, 0.0 }
  0xfa   : > { %v371_v56 = vadd.f32 %v561_v12, %v370_v54  ;;  %v389_v59 = vmax.f32 %v347_v51, 0.0  ;;  %v394_v62 = vmax.f32 %v368_v48, 0.0 }
  0xfb   : > { %v397_v60 = vmax.f32 %v379_v52, 0.0  ;;  %v387_v63 = vmax.f32 %v339_v55, 0.0 }
  0xfc   : > { %v395_v0 = vmax.f32 %v371_v56, 0.0  ;;  %v637_v1 = vpack.c.bf16 %v389_v59, %v388_v57 }
  0xfd   : > { %v657_v2 = vpack.c.bf16 %v397_v60, %v396_v58  ;;  %v632_v3 = vpack.c.bf16 %v387_v63, %v386_v61 }
  0xfe   : > { %v652_v4 = vpack.c.bf16 %v395_v0, %v394_v62  ;;  %661 = vst [vmem:[%s921_s17 + $0x18] sm:$0xff] %v637_v1  }
  0xff   : > { %665 = vst [vmem:[%s921_s17 + $0x38] sm:$0xff] %v657_v2   ;;  %660 = vst [vmem:[%s921_s17 + $0x10] sm:$0xff] %v632_v3  }
 0x100   : > { %664 = vst [vmem:[%s921_s17 + $0x30] sm:$0xff] %v652_v4  }
 0x101   : > { %772 = shalt.err (!%p769_p3)
}
 0x102   : > { %s773_s4 = scalar_lea.hbm %s932_s16, 1024  ;;  %s777_s7 = scalar_lea.hbm %s986_s3, 4096 }
 0x103   : > { %p774_p4 = scmp.ne.s32.totalorder %s932_s16, %s773_s4  ;;  %p778_p9 = scmp.lt.u32.totalorder %s932_s16, %s986_s3 }
 0x104   : > { %p779_p10 = scmp.lt.u32.totalorder %s777_s7, %s773_s4  ;;  %p781_p12 = scmp.lt.u32.totalorder %s773_s4, %s932_s16 }
 0x105   : > { %p775_p7 = pnand %p774_p4, %p884_p5 }
 0x106   : > { %p780_p11 = por %p779_p10, %p778_p9 }
 0x107   : > { %p776_p8 = pneg %p775_p7 }
 0x108   : > { %p782_p13 = por %p781_p12, %p780_p11 }
 0x10a   : > { %p783_p0 = pnand %p782_p13, %p776_p8 }
 0x10c   : > { %786 = shalt.err (!%p783_p0)
}
 0x10d   : > { %s824_s10 = smov 64   ;;  %s825_s11 = smov 4  }
 0x10e   : > { %707 = dma.vmem_to_hbm [thread:$0]  (%p884_p5), %s934_s20, 1024, %s932_s16, %s942_s26, %s824_s10, %s824_s10, %s825_s11  }
 0x10f PF: > { %p713_p1 = scmp.ge.s32.totalorder %s821_s15, 2  ;;  %s507_s17 = sand.u32 1, %s809_s12  }
 0x110   : > { %s508_s19 = scalar_lea.sflag [#allocation3], %s507_s17 }
 0x111   : > { %p710_p2 = pnand %p713_p1, %p888_p6 }
 0x113   : > { %804 = dma.done.wait (!%p710_p2), %s508_s19, 1024  }
 0x114   : > { %806 = vsyncadd (!%p710_p2), %s508_s19, 4294966272  ;;  %p13_p3 = scmp.ge.s32.totalorder %s871_s18, 6   ;;  %s989_s12 = smov %s813_s13 }
 0x115   : > { %s990_s13 = smov %s817_s14  ;;  %s991_s14 = smov %s882_s21 }
 0x116   : > { %s992_s15 = smov %s871_s18  ;;  %15 = sbr.rel (!%p13_p3) target bundleno = 3 (0x3), region = 67 }
 0x11d   :  { %513 = vsyncpa [#allocation3], 1 }
 0x11e   :  { %515 = vsyncpa [#allocation3 + $0x1], 1 }

</bundles_post_ra>
